<compile_context>
chip_gen: v7x
topology: tpu7x:2x2x1
jax: 0.10.0
libtpu: 0.0.40
codegen_flags: <defaults>
</compile_context>

<pallas_src>
import functools

import jax
import jax.numpy as jnp
from jax.experimental import pallas as pl
from jax.experimental.pallas import tpu as pltpu


# --------------------------------------------------------------------------- #
# Helpers
# --------------------------------------------------------------------------- #
def _round_up(a, b):
    return (a + b - 1) // b * b


def _tpu_config():
    """Returns (generation, target_block_bytes, vmem_budget_bytes, multi_tc)."""
    gen = 6
    try:
        kind = jax.devices()[0].device_kind.lower()
        for g in (7, 6, 5, 4):
            if f"v{g}" in kind:
                gen = g
                break
    except Exception:
        pass
    if gen >= 7:
        # 64 MiB physical VMEM, ~3.2 TB/s, 2 TensorCores.
        return gen, 10 << 20, 48 << 20, True
    if gen == 6:
        # 128 MiB physical VMEM, ~1.4 TB/s, 1 TensorCore.
        return gen, 16 << 20, 96 << 20, False
    if gen == 5:
        # ~820 GB/s: 4-8 MiB blocks already amortize step overhead.
        return gen, 6 << 20, 96 << 20, False
    # v4 / unknown: conservative, assume 2 TCs (megacore).
    return gen, 8 << 20, 64 << 20, True


# --------------------------------------------------------------------------- #
# Fused single-pass kernel (default path)
# --------------------------------------------------------------------------- #
def _wrcam_fused_kernel(x_ref, w1t_ref, b1_ref, w2t_ref, b2_ref, o_ref, *,
                        inv_hw, scale_in_io_dtype):
    x = x_ref[...]                                               # (Bt, C, HW)

    # Global average pool: cast fused into the reduce (no f32 block copy),
    # accumulate in f32, divide by the true HW.
    pooled = jnp.sum(x.astype(jnp.float32), axis=-1) * inv_hw    # (Bt, C) f32

    # Gate MLP: lane-dense rows, pre-transposed weights, f32 math.
    h = jnp.tanh(
        jnp.dot(pooled, w1t_ref[...], preferred_element_type=jnp.float32)
        + b1_ref[...]
    )                                                            # (Bt, Cr)
    att = jnp.tanh(
        jnp.dot(h, w2t_ref[...], preferred_element_type=jnp.float32)
        + b2_ref[...]
    )                                                            # (Bt, C)

    if scale_in_io_dtype:
        # v6e/v7x bf16 (or any f32 I/O): multiply in the I/O dtype.
        o_ref[...] = x * att.astype(o_ref.dtype)[:, :, None]
    else:
        # v5e bf16 path: no bf16 VALU, keep the multiply in f32.
        o_ref[...] = (x.astype(jnp.float32) * att[:, :, None]).astype(o_ref.dtype)


# --------------------------------------------------------------------------- #
# Two-pass fallback (single batch element does not fit the VMEM budget)
# --------------------------------------------------------------------------- #
def _pool_sum_kernel(x_ref, sum_ref, *, hw, ts):
    s = pl.program_id(1)

    @pl.when(s == 0)
    def _():
        sum_ref[...] = jnp.zeros_like(sum_ref)

    x = x_ref[...].astype(jnp.float32)                           # (1, C, Ts)
    # Mask the ragged spatial tail (OOB reads of the boundary block are
    # unspecified; the select keeps them out of the sum).
    lane = jax.lax.broadcasted_iota(jnp.int32, x.shape, 2)
    x = jnp.where(s * ts + lane < hw, x, 0.0)
    sum_ref[...] += jnp.sum(x, axis=-1)[:, None, :]              # (1, 1, C)


def _scale_kernel(x_ref, att_ref, o_ref, *, scale_in_io_dtype):
    att = att_ref[...]                                           # (1, 1, C) f32
    if scale_in_io_dtype:
        o_ref[...] = x_ref[...] * att.astype(o_ref.dtype)[:, 0, :, None]
    else:
        o_ref[...] = (x_ref[...].astype(jnp.float32)
                      * att[:, 0, :, None]).astype(o_ref.dtype)


def _wrcam_two_pass(x, w1, b1, w2, b2, *, target_block_bytes, vmem_budget,
                    scale_in_io_dtype):
    B, C, HW = x.shape
    itemsize = jnp.dtype(x.dtype).itemsize
    c_pad = _round_up(C, (8 * 4) // itemsize)

    # Spatial tile: multiple of 128 (or the full HW extent) sized to the
    # per-generation block target.
    ts = max(128, (target_block_bytes // max(c_pad * itemsize, 1)) // 128 * 128)
    if ts >= HW:
        ts = HW
    ns = int(pl.cdiv(HW, ts))
    # TODO(synk): if C alone is so large that a (1, C, 128) tile overflows VMEM,
    # a channel-tiled variant would be needed; not implemented here.

    tile_bytes = c_pad * _round_up(ts, 128) * itemsize
    vmem1 = int(min(max(2 * tile_bytes + (4 << 20), 32 << 20), vmem_budget))
    vmem2 = int(min(max(4 * tile_bytes + 2 * tile_bytes * (4 // itemsize)
                        + (4 << 20), 32 << 20), vmem_budget))

    # Pass 1: spatially tiled global-sum pooling.
    sums = pl.pallas_call(
        functools.partial(_pool_sum_kernel, hw=HW, ts=ts),
        out_shape=jax.ShapeDtypeStruct((B, 1, C), jnp.float32),
        grid_spec=pltpu.PrefetchScalarGridSpec(
            num_scalar_prefetch=0,
            grid=(B, ns),
            in_specs=[pl.BlockSpec((1, C, ts), lambda b, s: (b, 0, s))],
            out_specs=pl.BlockSpec((1, 1, C), lambda b, s: (b, 0, 0)),
        ),
        compiler_params=pltpu.CompilerParams(
            dimension_semantics=("parallel", "arbitrary"),
            vmem_limit_bytes=vmem1,
        ),
    )(x)

    # Tiny gate MLP in plain XLA (negligible cost).
    pooled = sums[:, 0, :] * (1.0 / float(HW))                   # (B, C) f32
    h = jnp.tanh(pooled @ w1.T.astype(jnp.float32) + b1.astype(jnp.float32))
    att = jnp.tanh(h @ w2.T.astype(jnp.float32) + b2.astype(jnp.float32))
    att3 = att.reshape(B, 1, C).astype(jnp.float32)

    # Pass 2: spatially tiled scale.
    out = pl.pallas_call(
        functools.partial(_scale_kernel, scale_in_io_dtype=scale_in_io_dtype),
        out_shape=jax.ShapeDtypeStruct((B, C, HW), x.dtype),
        grid_spec=pltpu.PrefetchScalarGridSpec(
            num_scalar_prefetch=0,
            grid=(B, ns),
            in_specs=[pl.BlockSpec((1, C, ts), lambda b, s: (b, 0, s)),
                      pl.BlockSpec((1, 1, C), lambda b, s: (b, 0, 0))],
            out_specs=pl.BlockSpec((1, C, ts), lambda b, s: (b, 0, s)),
        ),
        compiler_params=pltpu.CompilerParams(
            dimension_semantics=("parallel", "parallel"),
            vmem_limit_bytes=vmem2,
        ),
    )(x, att3)
    return out


# --------------------------------------------------------------------------- #
# Public wrapper
# --------------------------------------------------------------------------- #
def wrcam(x_nchw, w1, b1, w2, b2, *, force_two_pass=False):
    B, C, H, W = x_nchw.shape
    Cr = w1.shape[0]
    HW = H * W
    x = x_nchw.reshape(B, C, HW)          # no pad, no extra HBM passes

    gen, target_block_bytes, vmem_budget, multi_tc = _tpu_config()
    itemsize = jnp.dtype(x.dtype).itemsize
    # f32 I/O: scale in I/O dtype trivially. bf16 I/O: only on v6e/v7x
    # (v5e has no bf16 VALU, keep the f32 multiply there).
    scale_in_io_dtype = (itemsize >= 4) or (gen >= 6)

    # --- honest per-batch VMEM footprint (sublane + lane padding) -----------
    c_pad = _round_up(C, (8 * 4) // itemsize)
    hw_pad = _round_up(HW, 128)
    per_batch_bytes = c_pad * hw_pad * itemsize
    per_batch_f32_bytes = _round_up(C, 8) * hw_pad * 4
    needs_f32_copy = (not scale_in_io_dtype) and itemsize < 4
    weight_bytes = 2 * (C * Cr * 2 + C + Cr) * 4   # double-buffered, tiny

    def vmem_estimate(bt):
        block = bt * per_batch_bytes
        extra = bt * per_batch_f32_bytes if needs_f32_copy else 0
        return 4 * block + extra + weight_bytes + (2 << 20)

    # --- batch-block selection ----------------------------------------------
    Bt = max(1, min(B, target_block_bytes // max(per_batch_bytes, 1)))
    while B % Bt:
        Bt -= 1
    while Bt > 1 and vmem_estimate(Bt) > vmem_budget:
        Bt -= 1
        while B % Bt:
            Bt -= 1

    if force_two_pass or vmem_estimate(Bt) > vmem_budget:
        out = _wrcam_two_pass(
            x, w1, b1, w2, b2,
            target_block_bytes=target_block_bytes,
            vmem_budget=vmem_budget,
            scale_in_io_dtype=scale_in_io_dtype,
        )
        return out.reshape(B, C, H, W)

    if multi_tc and B >= 2:
        # Keep the batch grid even so neither TensorCore idles on the tail.
        grid_b = B // Bt
        if grid_b < 2 or grid_b % 2:
            for bt in range(Bt, 0, -1):
                if B % bt == 0 and (B // bt) % 2 == 0:
                    Bt = bt
                    break
    grid_b = B // Bt

    vmem_limit = int(min(max(vmem_estimate(Bt), 32 << 20), vmem_budget))

    # --- weights: pre-transposed, lane-dense rows, f32 gate math ------------
    w1t = w1.T.astype(jnp.float32)            # (C, Cr)
    w2t = w2.T.astype(jnp.float32)            # (Cr, C)
    b1r = b1.reshape(1, Cr).astype(jnp.float32)
    b2r = b2.reshape(1, C).astype(jnp.float32)

    kernel = functools.partial(
        _wrcam_fused_kernel,
        inv_hw=1.0 / float(HW),
        scale_in_io_dtype=scale_in_io_dtype,
    )

    out = pl.pallas_call(
        kernel,
        out_shape=jax.ShapeDtypeStruct((B, C, HW), x.dtype),
        grid_spec=pltpu.PrefetchScalarGridSpec(
            num_scalar_prefetch=0,
            grid=(grid_b,),
            in_specs=[
                pl.BlockSpec((Bt, C, HW), lambda b: (b, 0, 0)),   # x block
                pl.BlockSpec((C, Cr), lambda b: (0, 0)),          # w1^T
                pl.BlockSpec((1, Cr), lambda b: (0, 0)),          # b1 row
                pl.BlockSpec((Cr, C), lambda b: (0, 0)),          # w2^T
                pl.BlockSpec((1, C), lambda b: (0, 0)),           # b2 row
            ],
            out_specs=pl.BlockSpec((Bt, C, HW), lambda b: (b, 0, 0)),
        ),
        compiler_params=pltpu.CompilerParams(
            dimension_semantics=("parallel",),
            vmem_limit_bytes=vmem_limit,
        ),
    )(x, w1t, b1r, w2t, b2r)

    return out.reshape(B, C, H, W)


def wrcam_reference(x_nchw, w1, b1, w2, b2):
    # Pure-JAX reference mirroring the PyTorch forward exactly.
    pooled = jnp.mean(x_nchw.astype(jnp.float32), axis=(2, 3))   # (B, C)
    h = jnp.tanh(pooled @ w1.T + b1)                             # (B, Cr)
    att = jnp.tanh(h @ w2.T + b2)                                # (B, C)
    return (x_nchw.astype(jnp.float32) * att[:, :, None, None]).astype(
        x_nchw.dtype
    )


if __name__ == "__main__":
    # Small shapes consistent with the module.
    B, C, H, W = 2, 4, 16, 16
    reduction_ratio = 2
    Cr = C // reduction_ratio

    key = jax.random.PRNGKey(0)
    kx, k1, k2, k3, k4 = jax.random.split(key, 5)

    x = jax.random.normal(kx, (B, C, H, W), dtype=jnp.float32)

    # Deterministic PyTorch-Linear-style init: U(-1/sqrt(fan_in), 1/sqrt(fan_in))
    bound1 = 1.0 / float(C) ** 0.5
    w1 = jax.random.uniform(k1, (Cr, C), jnp.float32, -bound1, bound1)
    b1 = jax.random.uniform(k2, (Cr,), jnp.float32, -bound1, bound1)
    bound2 = 1.0 / float(Cr) ** 0.5
    w2 = jax.random.uniform(k3, (C, Cr), jnp.float32, -bound2, bound2)
    b2 = jax.random.uniform(k4, (C,), jnp.float32, -bound2, bound2)

    ref = wrcam_reference(x, w1, b1, w2, b2)

    # Fused single-pass path (HW = 256, lane-dense).
    out = jax.block_until_ready(wrcam(x, w1, b1, w2, b2))
    assert out.shape == (B, C, H, W)
    assert jnp.allclose(out, ref, atol=1e-4, rtol=1e-4), "mismatch vs reference"

    # Ragged spatial extent (HW = 49): full-extent block, no pad/slice passes.
    H2 = W2 = 7
    x2 = jax.random.normal(kx, (B, C, H2, W2), dtype=jnp.float32)
    out2 = jax.block_until_ready(wrcam(x2, w1, b1, w2, b2))
    ref2 = wrcam_reference(x2, w1, b1, w2, b2)
    assert out2.shape == (B, C, H2, W2)
    assert jnp.allclose(out2, ref2, atol=1e-4, rtol=1e-4), "mismatch (ragged HW)"

    # Exercise the two-pass fallback (used when one batch element overflows
    # the VMEM budget) on the small input to verify it compiles and matches.
    out3 = jax.block_until_ready(wrcam(x, w1, b1, w2, b2, force_two_pass=True))
    assert jnp.allclose(out3, ref, atol=1e-4, rtol=1e-4), "mismatch (two-pass)"

    print("KERNEL_OK")
</pallas_src>

<mosaic_0001>
module attributes {stable_mosaic.version = 11 : i64} {
  func.func @_wrcam_fused_kernel(%arg0: i32, %arg1: memref<2x4x256xf32, #tpu.memory_space<vmem>>, %arg2: memref<4x2xf32, #tpu.memory_space<vmem>>, %arg3: memref<1x2xf32, #tpu.memory_space<vmem>>, %arg4: memref<2x4xf32, #tpu.memory_space<vmem>>, %arg5: memref<1x4xf32, #tpu.memory_space<vmem>>, %arg6: memref<2x4x256xf32, #tpu.memory_space<vmem>>) attributes {dimension_semantics = [#tpu.dimension_semantics<parallel>], iteration_bounds = array<i64: 1>, scalar_prefetch = 0 : i64, scratch_operands = 0 : i64, tpu.core_type = #tpu.core_type<tc>, window_params = [{transform_indices = @transform_0, window_bounds = array<i64: 2, 4, 256>}, {pipeline_mode = #tpu.pipeline_mode<synchronous>, transform_indices = @transform_1, window_bounds = array<i64: 4, 2>}, {pipeline_mode = #tpu.pipeline_mode<synchronous>, transform_indices = @transform_2, window_bounds = array<i64: 1, 2>}, {pipeline_mode = #tpu.pipeline_mode<synchronous>, transform_indices = @transform_3, window_bounds = array<i64: 2, 4>}, {pipeline_mode = #tpu.pipeline_mode<synchronous>, transform_indices = @transform_4, window_bounds = array<i64: 1, 4>}, {transform_indices = @transform_5, window_bounds = array<i64: 2, 4, 256>}]} {
    %c0 = arith.constant 0 : index
    %c0_0 = arith.constant 0 : index
    %c0_1 = arith.constant 0 : index
    %0 = vector.load %arg1[%c0, %c0_0, %c0_1] : memref<2x4x256xf32, #tpu.memory_space<vmem>>, vector<2x4x256xf32>
    %cst = arith.constant dense<0.000000e+00> : vector<2x4xf32>
    %1 = vector.multi_reduction <add>, %0, %cst [2] : vector<2x4x256xf32> to vector<2x4xf32>
    %cst_2 = arith.constant 3.906250e-03 : f32
    %2 = vector.broadcast %cst_2 : f32 to vector<2x4xf32>
    %3 = arith.mulf %1, %2 : vector<2x4xf32>
    %c0_3 = arith.constant 0 : index
    %c0_4 = arith.constant 0 : index
    %4 = vector.load %arg2[%c0_3, %c0_4] : memref<4x2xf32, #tpu.memory_space<vmem>>, vector<4x2xf32>
    %cst_5 = arith.constant dense<0.000000e+00> : vector<2x2xf32>
    %5 = tpu.matmul %3, %4, %cst_5 {dimension_numbers = #tpu.dot_dimension_numbers<[1], [0], [0], [1], [0, 0, 1, 1], [], []>} : vector<2x4xf32>, vector<4x2xf32>, vector<2x2xf32> -> vector<2x2xf32>
    %c0_6 = arith.constant 0 : index
    %c0_7 = arith.constant 0 : index
    %6 = vector.load %arg3[%c0_6, %c0_7] : memref<1x2xf32, #tpu.memory_space<vmem>>, vector<1x2xf32>
    %7 = vector.broadcast %6 : vector<1x2xf32> to vector<2x2xf32>
    %8 = arith.addf %5, %7 : vector<2x2xf32>
    %9 = math.tanh %8 : vector<2x2xf32>
    %c0_8 = arith.constant 0 : index
    %c0_9 = arith.constant 0 : index
    %10 = vector.load %arg4[%c0_8, %c0_9] : memref<2x4xf32, #tpu.memory_space<vmem>>, vector<2x4xf32>
    %cst_10 = arith.constant dense<0.000000e+00> : vector<2x4xf32>
    %11 = tpu.matmul %9, %10, %cst_10 {dimension_numbers = #tpu.dot_dimension_numbers<[1], [0], [0], [1], [0, 0, 1, 1], [], []>} : vector<2x2xf32>, vector<2x4xf32>, vector<2x4xf32> -> vector<2x4xf32>
    %c0_11 = arith.constant 0 : index
    %c0_12 = arith.constant 0 : index
    %12 = vector.load %arg5[%c0_11, %c0_12] : memref<1x4xf32, #tpu.memory_space<vmem>>, vector<1x4xf32>
    %13 = vector.broadcast %12 : vector<1x4xf32> to vector<2x4xf32>
    %14 = arith.addf %11, %13 : vector<2x4xf32>
    %15 = math.tanh %14 : vector<2x4xf32>
    %16 = vector.shape_cast %15 : vector<2x4xf32> to vector<2x4x1xf32>
    %17 = vector.broadcast %16 : vector<2x4x1xf32> to vector<2x4x256xf32>
    %18 = arith.mulf %0, %17 : vector<2x4x256xf32>
    %c0_13 = arith.constant 0 : index
    %c0_14 = arith.constant 0 : index
    %c0_15 = arith.constant 0 : index
    %19 = vector.load %arg6[%c0_13, %c0_14, %c0_15] : memref<2x4x256xf32, #tpu.memory_space<vmem>>, vector<2x4x256xf32>
    tpu.vector_store %arg6[%c0_13, %c0_14, %c0_15], %18 {strides = array<i32>} : memref<2x4x256xf32, #tpu.memory_space<vmem>>, vector<2x4x256xf32>,
    return
  }
  func.func @transform_0(%arg0: i32) -> (i32, i32, i32) {
    %c0_i32 = arith.constant 0 : i32
    %c0_i32_0 = arith.constant 0 : i32
    %c0_i32_1 = arith.constant 0 : i32
    return %arg0, %c0_i32, %c0_i32_0 : i32, i32, i32
  }
  func.func @transform_1(%arg0: i32) -> (i32, i32) {
    %c0_i32 = arith.constant 0 : i32
    %c0_i32_0 = arith.constant 0 : i32
    %c0_i32_1 = arith.constant 0 : i32
    return %c0_i32, %c0_i32_0 : i32, i32
  }
  func.func @transform_2(%arg0: i32) -> (i32, i32) {
    %c0_i32 = arith.constant 0 : i32
    %c0_i32_0 = arith.constant 0 : i32
    %c0_i32_1 = arith.constant 0 : i32
    return %c0_i32, %c0_i32_0 : i32, i32
  }
  func.func @transform_3(%arg0: i32) -> (i32, i32) {
    %c0_i32 = arith.constant 0 : i32
    %c0_i32_0 = arith.constant 0 : i32
    %c0_i32_1 = arith.constant 0 : i32
    return %c0_i32, %c0_i32_0 : i32, i32
  }
  func.func @transform_4(%arg0: i32) -> (i32, i32) {
    %c0_i32 = arith.constant 0 : i32
    %c0_i32_0 = arith.constant 0 : i32
    %c0_i32_1 = arith.constant 0 : i32
    return %c0_i32, %c0_i32_0 : i32, i32
  }
  func.func @transform_5(%arg0: i32) -> (i32, i32, i32) {
    %c0_i32 = arith.constant 0 : i32
    %c0_i32_0 = arith.constant 0 : i32
    %c0_i32_1 = arith.constant 0 : i32
    return %arg0, %c0_i32, %c0_i32_0 : i32, i32, i32
  }
}

</mosaic_0001>

<bundles_post_ra>
// kernel: tpu_custom_call.1
= control target key start
LH: loop header
LB: loop body
LE: loop exit
PB: predicated region body
PF: predicated region fallthrough
CT: control target
= control target key end

     0   :  { %10 = vsyncpa [#allocation3], 0  ;;  %s472_s0 = inlined_call_operand.hbm [shape: f32[2,4,256], index: 0, kind: input, shape index: {}]   ;;  %s473_s1 = inlined_call_operand.vmem [shape: f32[4,2], index: 1, kind: input, shape index: {}]   ;;  %s474_s2 = inlined_call_operand.vmem [shape: f32[1,2], index: 2, kind: input, shape index: {}]   ;;  %s475_s3 = inlined_call_operand.vmem [shape: f32[2,4], index: 3, kind: input, shape index: {}]   ;;  %s476_s4 = inlined_call_operand.vmem [shape: f32[1,4], index: 4, kind: input, shape index: {}]   ;;  %s477_s5 = inlined_call_operand.hbm [shape: f32[2,4,256], index: 5, kind: output, shape index: {}]  }
   0x1   :  { %11 = vsyncpa [#allocation4], 0  ;;  %s376_s18 = smov [#allocation2]   ;;  %s328_s22 = scalar_lea.hbm %s472_s0, 256 }
   0x2   :  { %s17_s19 = sshll.u32 %s376_s18, 4  ;;  %p329_p0 = scmp.ne.s32.totalorder %s472_s0, %s328_s22  ;;  %s18_s19 = int_to_ptr.vmem [resolvable:$true] %s17_s19 }
   0x3   :  { %p332_p1 = scmp.lt.u32.totalorder %s328_s22, %s472_s0 }
   0x5   :  { %p334_p2 = pnand %p332_p1, %p329_p0 }
   0x7   :  { %337 = shalt.err (!%p334_p2)
}
   0x8   :  { %s338_s27 = scalar_lea.vmem %s18_s19, 256  ;;  %p343_p4 = scmp.lt.s32.totalorder %s18_s19, %s18_s19 }
   0x9   :  { %p339_p3 = scmp.ne.s32.totalorder %s18_s19, %s338_s27  ;;  %p344_p5 = scmp.lt.s32.totalorder %s338_s27, %s338_s27 }
   0xb   :  { %p345_p6 = por %p344_p5, %p343_p4 }
   0xd   :  { %p346_p7 = pnand %p345_p6, %p339_p3 }
   0xf   :  { %349 = shalt.err (!%p346_p7)
}
  0x10   :  { %s377_s28 = smov 128   ;;  %s378_s29 = smov 8  }
  0x11   :  { %23 = dma.hbm_to_vmem [thread:$0]  %s472_s0, 256, %s18_s19, [#allocation3], %s377_s28, %s377_s28, %s378_s29  }
  0x12   :  { %372 = dma.done.wait [#allocation3], 256  }
  0x13   :  { %373 = vsyncadd [#allocation3], 4294967040  ;;  %vm43_vm0 = vcmask 1043456   ;;  %v428_v0 = vld [vmem:[#allocation2] sm:$0xff]  ;;  %v430_v1 = vld [vmem:[#allocation2 + $0x8] sm:$0xff]  ;;  %v379_v11 = vmov 0.0   ;;  %v66_v12 = vlaneseq }
  0x14   :  { %v39_v2 = vcombine.high %v428_v0, %v428_v0  ;;  %v44_v3 = vsel %vm43_vm0, %v428_v0, 0.0  ;;  %v40_v4 = vcombine.high %v430_v1, %v430_v1  ;;  %v49_v6 = vsel %vm43_vm0, %v430_v1, 0.0  ;;  %v56_v10 = vld [vmem:[%s473_s1] sm:$0xf]  ;;  %305 = vmatprep.subr.mxu0 %v379_v11  ;;  %310 = vmatprep.subr.mxu1 %v379_v11 }
  0x15   :  { %vm380_vm1 = vmmov 0   ;;  %306 = vmatpush3.msk.msra.mxu0 %vm43_vm0, %v56_v10  ;;  %v67_v13 = vand.u32 127, %v66_v12  ;;  %v69_v14 = vshrl.u32 %v66_v12, 7  ;;  %vm76_vm2 = vcmask 1041409   ;;  %v155_v23 = vld [vmem:[%s475_s3] sm:$0x3] }
  0x16   :  { %v45_v5 = vsel %vm43_vm0, %v39_v2, 0.0  ;;  %v50_v7 = vsel %vm43_vm0, %v40_v4, 0.0  ;;  %307 = vmatprep.mubr.msk.f32.mxu0 %vm380_vm1, %v379_v11  ;;  %312 = vmatprep.mubr.msk.f32.mxu1 %vm380_vm1, %v379_v11  ;;  %vm78_vm3 = vcmask 31744   ;;  %vm167_vm4 = vcmask 1041408   ;;  %v295_v24 = vld [vmem:[%s474_s2] ss:$0 sm:$0xff] }
  0x17   :  { %v46_v8 = vadd.f32 %v45_v5, %v44_v3  ;;  %v51_v9 = vadd.f32 %v50_v7, %v49_v6  ;;  %v70_v16 = vsub.s32 %v67_v13, %v69_v14  ;;  %311 = vmatpush3.msk.msra.mxu1 %vm167_vm4, %v155_v23  ;;  %vm163_vm5 = vcmask 15360   ;;  %v298_v29 = vld [vmem:[%s476_s4] ss:$0 sm:$0xff]  ;;  %s382_s2 = smov [#allocation5]  }
  0x18   :  { %v244_v33 = vsub.s32 0, %v69_v14  ;;  %v251_v36 = vsub.s32 1, %v69_v14  ;;  %v381_v38 = vmov 839922192   ;;  %s283_s3 = sshll.u32 %s382_s2, 4  ;;  %s284_s3 = int_to_ptr.vmem [resolvable:$true] %s283_s3 }
  0x19   :  { %47 = vadd.xlane.f32.xlu0 %v46_v8  ;;  %v259_v39 = vunpack.c.l.s4 %v381_v38  ;;  %s350_s4 = scalar_lea.vmem %s284_s3, 256  ;;  %p355_p9 = scmp.lt.s32.totalorder %s284_s3, %s284_s3 }
  0x1a   :  { %p351_p8 = scmp.ne.s32.totalorder %s284_s3, %s350_s4  ;;  %p356_p10 = scmp.lt.s32.totalorder %s350_s4, %s350_s4 }
  0x1b   :  { %v260_v40 = vunpack.c.0.s8 %v259_v39 }
  0x1c   :  { %p357_p11 = por %p356_p10, %p355_p9 }
  0x1d   :  { %52 = vadd.xlane.f32.xlu0 %v51_v9  ;;  %v263_v41 = vsub.s32 %v260_v40, %v69_v14 }
  0x1e   :  { %p358_p12 = pnand %p357_p11, %p351_p8 }
  0xa6   :  { %v48_v15 = vpop.xlane.xlu0 %47 }
  0xa7   :  { %v54_v17 = vmul.f32 0.00390625, %v48_v15 }
  0xa9   :  { %v71_v20 = vrot.slane %v54_v17, %v70_v16 }
  0xaa   :  { %v53_v18 = vpop.xlane.xlu0 %52 }
  0xab   :  { %v55_v19 = vmul.f32 0.00390625, %v53_v18 }
  0xad   :  { %v75_v21 = vrot.slane %v55_v19, %v70_v16 }
  0xaf   :  { %v77_v22 = vsel %vm76_vm2, %v75_v21, %v71_v20 }
  0xb0   :  { %308 = vmatmul.mubr.msk.f32.vlgmr.msra.gmra.mrb[0].mxu0 %vm78_vm3, %v77_v22 }
 0x183   :  { %v150_v25 = vpop.f32.mrb[0].mxu0 }
 0x184   :  { %v151_v26 = vadd.f32 %v295_v24, %v150_v25  ;;  %v309_v27 = vpop.f32.mrb[1].mxu0 }
 0x186   :  { %324 = vtanh.f32 %v151_v26 }
 0x190   :  { %v325_v28 = vpop.eup %324 }
 0x191   :  { %313 = vmatmul.mubr.msk.f32.vlgmr.msra.gmra.mrb[0].mxu1 %vm163_vm5, %v325_v28 }
 0x264   :  { %v237_v30 = vpop.f32.mrb[0].mxu1 }
 0x265   :  { %v238_v31 = vadd.f32 %v298_v29, %v237_v30  ;;  %v314_v32 = vpop.f32.mrb[1].mxu1 }
 0x267   :  { %326 = vtanh.f32 %v238_v31 }
 0x271   :  { %v327_v34 = vpop.eup %326 }
 0x272   :  { %v245_v35 = vrot.slane %v327_v34, %v244_v33  ;;  %v252_v37 = vrot.slane %v327_v34, %v251_v36 }
 0x274   :  { %247 = vbcast.lane.b32.xlu1 %v245_v35, 256 }
 0x278   :  { %254 = vbcast.lane.b32.xlu1 %v252_v37, 256 }
 0x2e6   :  { %v248_v42 = vpop.permute.xlu1 %247 }
 0x2e7   :  { %v264_v43 = vrot.slane %v248_v42, %v263_v41 }
 0x2e9   :  { %v274_v44 = vmul.f32 %v264_v43, %v428_v0 }
 0x2ea   :  { %v255_v45 = vpop.permute.xlu1 %254 }
 0x2eb   :  { %276 = vst [vmem:[#allocation5] sm:$0xff] %v274_v44  ;;  %v271_v46 = vrot.slane %v255_v45, %v263_v41 }
 0x2ed   :  { %v275_v47 = vmul.f32 %v271_v46, %v430_v1 }
 0x2ef   :  { %277 = vst [vmem:[#allocation5 + $0x8] sm:$0xff] %v275_v47 }
 0x2f0   :  { %361 = shalt.err (!%p358_p12)
}
 0x2f1   :  { %s362_s15 = scalar_lea.hbm %s477_s5, 256 }
 0x2f2   :  { %p363_p13 = scmp.ne.s32.totalorder %s477_s5, %s362_s15  ;;  %p366_p0 = scmp.lt.u32.totalorder %s362_s15, %s477_s5 }
 0x2f4   :  { %p368_p1 = pnand %p366_p0, %p363_p13 }
 0x2f6   :  { %371 = shalt.err (!%p368_p1)
}
 0x2f7   :  { %289 = dma.vmem_to_hbm [thread:$0]  %s284_s3, 256, %s477_s5, [#allocation4], %s377_s28, %s377_s28, %s378_s29  }
 0x2f8   :  { %374 = dma.done.wait [#allocation4], 256  }
 0x2f9   :  { %375 = vsyncadd [#allocation4], 4294967040 }
 0x2fa   :  { %293 = vsyncpa [#allocation3], 1 }
 0x2fb   :  { %294 = vsyncpa [#allocation4], 1 }

</bundles_post_ra>
